<compile_context>
chip_gen: v7x
topology: tpu7x:2x2x1
jax: 0.10.0
libtpu: 0.0.40
codegen_flags: <defaults>
</compile_context>

<pallas_src>
import functools

import numpy as np
import jax
import jax.numpy as jnp
from jax import lax
from jax.experimental import pallas as pl
from jax.experimental.pallas import tpu as pltpu


def _cparams(*sem):
    # Explicit per-generation VMEM budget: 32 MiB fits the scoped default on
    # v6e/v7x and is well under v5e's 128 MiB physical VMEM.
    return pltpu.CompilerParams(dimension_semantics=tuple(sem),
                                vmem_limit_bytes=32 * 1024 * 1024)


def _batch_tile(B):
    """Batch tile so the grid has 2 parallel steps (v7x megacore) when possible."""
    return B // 2 if (B >= 2 and B % 2 == 0) else B


# ---------------------------------------------------------------------------
# Kernel 1: Conv1d as K accumulated matmuls over stride-partitioned views
#           (no im2col gather, 1x HBM traffic), output already (B, T_out, C).
# ---------------------------------------------------------------------------
def _conv1d_kernel(*refs, ksize, stride):
    part_refs = refs[:stride]                 # each (B, Lp//stride, C_in)
    w_ref = refs[stride]                      # (K, C_in, C_out)
    b_ref = refs[stride + 1]                  # (1, C_out)
    o_ref = refs[stride + 2]                  # (B, T_out, C_out)
    B, T_out, C_out = o_ref.shape
    bias = b_ref[...]
    for b in range(B):
        acc = jnp.zeros((T_out, C_out), jnp.float32)
        for k in range(ksize):
            q, r = divmod(k, stride)
            xk = part_refs[r][b, q:q + T_out, :]            # (T_out, C_in) static view
            acc = acc + jnp.dot(xk, w_ref[k], preferred_element_type=jnp.float32)
        o_ref[b] = acc + bias


def conv1d_to_btc(x, w_k, b, ksize, stride):
    """Conv1d (NCL in) -> (B, T_out, C_out).  w_k is (K, C_in, C_out)."""
    B, C_in, L = x.shape
    K, _, C_out = w_k.shape
    T_out = (L - ksize) // stride + 1
    Lp = pl.cdiv(L, stride) * stride
    xt = jnp.transpose(x, (0, 2, 1))                        # (B, L, C_in)
    if Lp != L:
        xt = jnp.pad(xt, ((0, 0), (0, Lp - L), (0, 0)))
    parts = [xt[:, r::stride, :] for r in range(stride)]    # strided slices, not a gather
    Ls = Lp // stride

    def _m3(i):
        return (0, 0, 0)

    def _m2(i):
        return (0, 0)

    kernel = functools.partial(_conv1d_kernel, ksize=ksize, stride=stride)
    in_specs = ([pl.BlockSpec((B, Ls, C_in), _m3) for _ in range(stride)]
                + [pl.BlockSpec((K, C_in, C_out), _m3),
                   pl.BlockSpec((1, C_out), _m2)])
    # TODO(synk): tile over B*T_out with a (parallel, arbitrary) grid at production sizes.
    return pl.pallas_call(
        kernel,
        out_shape=jax.ShapeDtypeStruct((B, T_out, C_out), jnp.float32),
        grid=(1,),
        in_specs=in_specs,
        out_specs=pl.BlockSpec((B, T_out, C_out), _m3),
        compiler_params=_cparams("arbitrary"),
    )(*parts, w_k, b)


# ---------------------------------------------------------------------------
# Kernel 2: bidirectional, length-masked GRU (pack_padded_sequence + GRU +
#           pad_packed_sequence semantics).  PyTorch gate order: r, z, n.
#           Input projection hoisted, fwd/bwd fused, single (B,T,2H) output.
# ---------------------------------------------------------------------------
def _gru_bidir_kernel(x_ref, valid_ref, w_ih_ref, whf_ref, whb_ref,
                      bih_ref, bhf_ref, bhb_ref, o_ref,
                      gxf_ref, gxb_ref, of_ref, ob_ref):
    nb, T, D = x_ref.shape
    H = whf_ref.shape[0]
    G = 3 * H

    # Hoisted input projection for BOTH directions: (T, D) @ (D, 6H).
    w_ih = w_ih_ref[...]
    b_ih = bih_ref[...]
    for b in range(nb):
        g = jnp.dot(x_ref[b], w_ih, preferred_element_type=jnp.float32) + b_ih
        gxf_ref[b] = g[:, :G]
        gxb_ref[b] = g[:, G:]

    # Hoisted recurrent weights / biases (loaded once, not per step).
    whf = whf_ref[...]
    whb = whb_ref[...]
    bhf = bhf_ref[...]
    bhb = bhb_ref[...]

    def gates(gx_t, h, w_hh, b_hh):
        gh = jnp.dot(h, w_hh, preferred_element_type=jnp.float32) + b_hh
        r = jax.nn.sigmoid(gx_t[:, :H] + gh[:, :H])
        z = jax.nn.sigmoid(gx_t[:, H:2 * H] + gh[:, H:2 * H])
        n = jnp.tanh(gx_t[:, 2 * H:] + r * gh[:, 2 * H:])
        return (1.0 - z) * n + z * h

    def body(i, carry):
        hf, hb = carry
        tf = i
        tr = T - 1 - i
        gxf = gxf_ref[:, pl.ds(tf, 1), :][:, 0, :]           # (nb, 3H)
        gxb = gxb_ref[:, pl.ds(tr, 1), :][:, 0, :]
        vf = valid_ref[:, pl.ds(tf, 1), :][:, 0, :]          # (nb, 1) in {0,1}
        vb = valid_ref[:, pl.ds(tr, 1), :][:, 0, :]
        hf_new = gates(gxf, hf, whf, bhf)
        hb_new = gates(gxb, hb, whb, bhb)
        hf = vf * hf_new + (1.0 - vf) * hf                   # freeze state past length
        hb = vb * hb_new + (1.0 - vb) * hb
        of_ref[:, pl.ds(tf, 1), :] = (vf * hf_new)[:, None, :]   # 0 at padded steps
        ob_ref[:, pl.ds(tr, 1), :] = (vb * hb_new)[:, None, :]
        return (hf, hb)

    h0 = jnp.zeros((nb, H), jnp.float32)
    lax.fori_loop(0, T, body, (h0, h0))
    # One lane-dense store of the fused bidirectional output.
    o_ref[...] = jnp.concatenate([of_ref[...], ob_ref[...]], axis=2)


def gru_bidirectional(x, valid_mask, p, nb):
    B, T, D = x.shape
    H = p['w_hh_f'].shape[0]

    def bmap(i):
        return (i, 0, 0)

    def wmap(i):
        return (0, 0)

    return pl.pallas_call(
        _gru_bidir_kernel,
        out_shape=jax.ShapeDtypeStruct((B, T, 2 * H), jnp.float32),
        grid=(B // nb,),
        in_specs=[pl.BlockSpec((nb, T, D), bmap),
                  pl.BlockSpec((nb, T, 1), bmap),
                  pl.BlockSpec((D, 6 * H), wmap),
                  pl.BlockSpec((H, 3 * H), wmap),
                  pl.BlockSpec((H, 3 * H), wmap),
                  pl.BlockSpec((1, 6 * H), wmap),
                  pl.BlockSpec((1, 3 * H), wmap),
                  pl.BlockSpec((1, 3 * H), wmap)],
        out_specs=pl.BlockSpec((nb, T, 2 * H), bmap),
        scratch_shapes=[pltpu.VMEM((nb, T, 3 * H), jnp.float32),
                        pltpu.VMEM((nb, T, 3 * H), jnp.float32),
                        pltpu.VMEM((nb, T, H), jnp.float32),
                        pltpu.VMEM((nb, T, H), jnp.float32)],
        compiler_params=_cparams("parallel"),
    )(x, valid_mask, p['w_ih_cat'], p['w_hh_f'], p['w_hh_b'],
      p['b_ih_cat'], p['b_hh_f'], p['b_hh_b'])


# ---------------------------------------------------------------------------
# Kernel 3: VQ nearest-neighbour quantization (forward of VQ_EMA_layer:
#           straight-through output == codebook entry; indices exported).
# ---------------------------------------------------------------------------
def _vq_kernel(x_ref, e_ref, e2_ref, q_ref, idx_ref):
    x = x_ref[...]                                            # (N, D)
    e = e_ref[...]                                            # (K, D)
    e2 = e2_ref[...]                                          # (1, K)
    K = e.shape[0]
    # x@e^T via dot_general (contract last dims) -- no transposed copy of e.
    xe = lax.dot_general(x, e, (((1,), (1,)), ((), ())),
                         preferred_element_type=jnp.float32)  # (N, K)
    dist = e2 - 2.0 * xe                                      # ||x||^2 dropped (argmin-equivalent)
    dmin = jnp.min(dist, axis=1, keepdims=True)
    iota = lax.broadcasted_iota(jnp.int32, dist.shape, 1)
    idx = jnp.min(jnp.where(dist == dmin, iota, K), axis=1, keepdims=True)  # first argmin
    idx_ref[...] = idx.astype(jnp.int32)
    onehot = (iota == idx).astype(jnp.float32)
    q_ref[...] = jnp.dot(onehot, e, preferred_element_type=jnp.float32)


def vq_quantize(x_flat, emb, e2):
    N, D = x_flat.shape
    K = emb.shape[0]

    def m2(i):
        return (0, 0)

    # TODO(synk): tile over N (multiple-of-8 blocks) for large B*T / codebooks.
    return pl.pallas_call(
        _vq_kernel,
        out_shape=(jax.ShapeDtypeStruct((N, D), jnp.float32),
                   jax.ShapeDtypeStruct((N, 1), jnp.int32)),
        grid=(1,),
        in_specs=[pl.BlockSpec((N, D), m2), pl.BlockSpec((K, D), m2),
                  pl.BlockSpec((1, K), m2)],
        out_specs=(pl.BlockSpec((N, D), m2), pl.BlockSpec((N, 1), m2)),
        compiler_params=_cparams("arbitrary"),
    )(x_flat, emb, e2)


# ---------------------------------------------------------------------------
# Kernel 4: GRUCell "rnn_pack" loop.  Input projection hoisted into VMEM
#           scratch; emit flags + destination slots (exclusive prefix sum of
#           emits) are scalar-prefetched into SMEM -> no per-step counter RMW.
# ---------------------------------------------------------------------------
def _rnn_pack_kernel(emit_ref, dst_ref, x_ref, seg_ref,
                     w_ih_ref, w_hh_ref, b_ih_ref, b_hh_ref,
                     o_ref, gx_ref):
    nb, T, D = x_ref.shape
    H = w_hh_ref.shape[0]
    row0 = pl.program_id(0) * nb

    o_ref[...] = jnp.zeros(o_ref.shape, o_ref.dtype)

    # Hoisted input projection: (T, D) @ (D, 3H) once per local row.
    w_ih = w_ih_ref[...]
    b_ih = b_ih_ref[...]
    for b in range(nb):
        gx_ref[b] = jnp.dot(x_ref[b], w_ih, preferred_element_type=jnp.float32) + b_ih

    w_hh = w_hh_ref[...]
    b_hh = b_hh_ref[...]

    def body(t, h):
        gx = gx_ref[:, pl.ds(t, 1), :][:, 0, :]               # (nb, 3H)
        gh = jnp.dot(h, w_hh, preferred_element_type=jnp.float32) + b_hh
        r = jax.nn.sigmoid(gx[:, :H] + gh[:, :H])
        z = jax.nn.sigmoid(gx[:, H:2 * H] + gh[:, H:2 * H])
        n = jnp.tanh(gx[:, 2 * H:] + r * gh[:, 2 * H:])
        h_new = (1.0 - z) * n + z * h

        for y in range(nb):
            gy = row0 + y

            @pl.when(emit_ref[gy, t] != 0)
            def _write(y=y, gy=gy):
                o_ref[y, pl.ds(dst_ref[gy, t], 1), :] = h_new[y:y + 1, :]

        mask = seg_ref[:, pl.ds(t, 1), :][:, 0, :]            # (nb, 1); 0 resets h at boundary
        return h_new * mask

    lax.fori_loop(0, T, body, jnp.zeros((nb, H), jnp.float32))


def rnn_pack(x, seg_mask, emit, dst, p, nb):
    B, T, D = x.shape
    H = p['w_hh'].shape[0]
    G = 3 * H

    def bmap(i, emit_ref, dst_ref):
        return (i, 0, 0)

    def wmap(i, emit_ref, dst_ref):
        return (0, 0)

    grid_spec = pltpu.PrefetchScalarGridSpec(
        num_scalar_prefetch=2,
        grid=(B // nb,),
        in_specs=[pl.BlockSpec((nb, T, D), bmap),
                  pl.BlockSpec((nb, T, 1), bmap),
                  pl.BlockSpec((D, G), wmap),
                  pl.BlockSpec((H, G), wmap),
                  pl.BlockSpec((1, G), wmap),
                  pl.BlockSpec((1, G), wmap)],
        out_specs=pl.BlockSpec((nb, T, H), bmap),
        scratch_shapes=[pltpu.VMEM((nb, T, G), jnp.float32)],
    )
    return pl.pallas_call(
        _rnn_pack_kernel,
        out_shape=jax.ShapeDtypeStruct((B, T, H), jnp.float32),
        grid_spec=grid_spec,
        compiler_params=_cparams("parallel"),
    )(emit, dst, x, seg_mask, p['w_ih'], p['w_hh'], p['b_ih'], p['b_hh'])


# ---------------------------------------------------------------------------
# Kernel 5: single-head attention pooling (softmax over time, masked at
#           t >= max_len to reproduce the (B, max_len, H) PyTorch pooling)
#           followed by L2 normalization.
# ---------------------------------------------------------------------------
def _att_norm_kernel(x_ref, tmask_ref, wh_ref, bh_ref, wo_ref, bo_ref, o_ref):
    nb, T, D = x_ref.shape
    wh = wh_ref[...]
    bh = bh_ref[...]
    wo = wo_ref[...]
    bo = bo_ref[...]
    tmask = tmask_ref[...][0]                                 # (T, 1); 0 or -1e30
    for b in range(nb):
        xb = x_ref[b]                                         # (T, D)
        hid = jnp.tanh(jnp.dot(xb, wh, preferred_element_type=jnp.float32) + bh)
        sc = jnp.dot(hid, wo, preferred_element_type=jnp.float32) + bo + tmask
        m = jnp.max(sc, axis=0, keepdims=True)
        e = jnp.exp(sc - m)
        denom = jnp.sum(e, axis=0, keepdims=True)
        alpha = e * pl.reciprocal(denom, approx=True)         # softmax over time (EUP recip)
        emb = jnp.sum(alpha * xb, axis=0, keepdims=True)      # (1, D)
        ssq = jnp.sum(emb * emb, axis=1, keepdims=True)
        o_ref[b] = emb * lax.rsqrt(jnp.maximum(ssq, 1e-24))   # L2 normalize (eps=1e-12 on norm)


def att_normalize(x, tmask, p, nb):
    B, T, D = x.shape
    Hh = p['w_h'].shape[1]

    def bmap(i):
        return (i, 0, 0)

    def cmap(i):
        return (0, 0, 0)

    def wmap(i):
        return (0, 0)

    out = pl.pallas_call(
        _att_norm_kernel,
        out_shape=jax.ShapeDtypeStruct((B, 1, D), jnp.float32),
        grid=(B // nb,),
        in_specs=[pl.BlockSpec((nb, T, D), bmap),
                  pl.BlockSpec((1, T, 1), cmap),
                  pl.BlockSpec((D, Hh), wmap),
                  pl.BlockSpec((1, Hh), wmap),
                  pl.BlockSpec((Hh, D), wmap),
                  pl.BlockSpec((1, D), wmap)],
        out_specs=pl.BlockSpec((nb, 1, D), bmap),
        compiler_params=_cparams("parallel"),
    )(x, tmask, p['w_h'], p['b_h'], p['w_o'], p['b_o'])
    return out[:, 0, :]


# ---------------------------------------------------------------------------
# Encoder (parameter setup + device-side glue; all hot-path compute is Pallas).
# ---------------------------------------------------------------------------
def _uniform(key, shape, scale):
    return jax.random.uniform(key, shape, jnp.float32, minval=-scale, maxval=scale)


class RnnPackEncoder:
    # TODO(synk): bf16 weight/activation storage for the MXU path on v6e/v7x
    # (keep f32 gate math); left in f32 here to keep parity with the reference.

    def __init__(self, config, key):
        self.config = config
        conv = config['conv']
        rnn = config['rnn']
        pack = config['rnn_pack']
        vq = config['VQ']
        att = config['att']
        assert att['heads'] == 1  # TODO(synk): multi-head concat for heads > 1
        keys = iter(jax.random.split(key, 64))

        # Conv1d: weights stored as (K, C_in, C_out), the per-tap matmul layout.
        kc = 1.0 / np.sqrt(conv['in_channels'] * conv['kernel_size'])
        w = _uniform(next(keys), (conv['out_channels'], conv['in_channels'],
                                  conv['kernel_size']), kc)
        self.conv_wk = jnp.transpose(w, (2, 1, 0))
        self.conv_b = _uniform(next(keys), (1, conv['out_channels']), kc)

        # Bidirectional GRU layers (pre-transposed; fwd/bwd input weights stacked).
        self.gru_params = []
        for i in range(len(rnn['n_layers'])):
            D, H = rnn['input_size'][i], rnn['hidden_size'][i]
            kg = 1.0 / np.sqrt(H)
            w_ih_f = _uniform(next(keys), (3 * H, D), kg).T
            w_hh_f = _uniform(next(keys), (3 * H, H), kg).T
            b_ih_f = _uniform(next(keys), (1, 3 * H), kg)
            b_hh_f = _uniform(next(keys), (1, 3 * H), kg)
            w_ih_b = _uniform(next(keys), (3 * H, D), kg).T
            w_hh_b = _uniform(next(keys), (3 * H, H), kg).T
            b_ih_b = _uniform(next(keys), (1, 3 * H), kg)
            b_hh_b = _uniform(next(keys), (1, 3 * H), kg)
            self.gru_params.append({
                'w_ih_cat': jnp.concatenate([w_ih_f, w_ih_b], axis=1),   # (D, 6H)
                'b_ih_cat': jnp.concatenate([b_ih_f, b_ih_b], axis=1),   # (1, 6H)
                'w_hh_f': w_hh_f, 'w_hh_b': w_hh_b,
                'b_hh_f': b_hh_f, 'b_hh_b': b_hh_b,
            })

        # GRUCell (rnn_pack) layers.
        # NOTE: apply_rnn_pack seeds h with the GRU hidden size, so the GRUCell
        # hidden size must equal the GRU hidden size.
        self.pack_params = []
        for i in range(len(pack['input_size'])):
            D, H = pack['input_size'][i], pack['hidden_size'][i]
            kg = 1.0 / np.sqrt(H)
            self.pack_params.append({
                'w_ih': _uniform(next(keys), (3 * H, D), kg).T,
                'w_hh': _uniform(next(keys), (3 * H, H), kg).T,
                'b_ih': _uniform(next(keys), (1, 3 * H), kg),
                'b_hh': _uniform(next(keys), (1, 3 * H), kg),
            })

        # VQ codebooks (one orientation only) + precomputed squared norms row.
        self.vq_emb = []
        self.vq_e2 = []
        for i in range(vq['n_layers']):
            e = jax.random.normal(next(keys), (vq['n_embs'][i], vq['emb_dim'][i]),
                                  jnp.float32)
            self.vq_emb.append(e)
            self.vq_e2.append(jnp.sum(e * e, axis=1)[None, :])            # (1, K)

        # Attention head.
        ka = 1.0 / np.sqrt(att['in_size'])
        ko = 1.0 / np.sqrt(att['hidden_size'])
        self.att_params = {
            'w_h': _uniform(next(keys), (att['hidden_size'], att['in_size']), ka).T,
            'b_h': _uniform(next(keys), (1, att['hidden_size']), ka),
            'w_o': _uniform(next(keys), (att['in_size'], att['hidden_size']), ko).T,
            'b_o': _uniform(next(keys), (1, att['in_size']), ko),
        }

    def __call__(self, inp, lengths):
        cfg = self.config
        B = inp.shape[0]
        ks, stride = cfg['conv']['kernel_size'], cfg['conv']['stride']
        nb = _batch_tile(B)

        x = conv1d_to_btc(inp, self.conv_wk, self.conv_b, ks, stride)   # (B, T, C_out)
        cor = lambda L: (int(L) - (ks - stride)) // stride
        lens = jnp.asarray([cor(y) for y in lengths], jnp.int32)        # (B,) on device

        r = rp = v = 0
        self.VQ_loss = jnp.float32(0.0)
        segs = None
        pool_limit = None

        for step_name in cfg['app_order']:
            T = x.shape[1]
            if step_name == 'rnn':
                vmask = (jnp.arange(T)[None, :] < lens[:, None]
                         ).astype(jnp.float32)[..., None]               # (B, T, 1)
                x = gru_bidirectional(x, vmask, self.gru_params[r], nb)
                r += 1
            elif step_name == 'VQ':
                Bx, T, D = x.shape
                x_flat = x.reshape(Bx * T, D)
                q, idx = vq_quantize(x_flat, self.vq_emb[v], self.vq_e2[v])
                self.VQ_loss = self.VQ_loss + jnp.mean((q - x_flat) ** 2)
                x = q.reshape(Bx, T, D)                 # straight-through forward value
                # indices2segs, fully on device (no host sync).
                idx2 = idx[:, 0].reshape(Bx, T)
                roll = jnp.roll(idx2, 1, axis=1).at[:, 0].set(-1)
                segs = jnp.roll((idx2 == roll).astype(jnp.float32), -1, axis=1)
                v += 1
            elif step_name == 'rnn_pack':
                # Emit flags and destination slots precomputed on device.
                t_iota = jnp.arange(T)[None, :]
                emit = ((segs == 0) & (t_iota < lens[:, None])).astype(jnp.int32)
                dst = jnp.cumsum(emit, axis=1) - emit            # exclusive prefix sum
                x = rnn_pack(x, segs[..., None], emit, dst,
                             self.pack_params[rp], nb)           # (B, T, H), static shape
                lens = jnp.sum(emit, axis=1).astype(jnp.int32)
                pool_limit = jnp.max(lens)                       # device scalar (= max_len)
                rp += 1

        T = x.shape[1]
        if pool_limit is None:
            tmask = jnp.zeros((1, T, 1), jnp.float32)
        else:
            # Mask t >= max_len so pooling matches PyTorch's (B, max_len, H) output.
            tmask = jnp.where(jnp.arange(T) < pool_limit, 0.0, -1e30
                              ).astype(jnp.float32).reshape(1, T, 1)
        return att_normalize(x, tmask, self.att_params, nb)


if __name__ == "__main__":
    config = {
        'conv': dict(in_channels=4, out_channels=32, kernel_size=4, stride=2, padding=0),
        'rnn': dict(max_len=64, input_size=[32], hidden_size=[16], n_layers=[1],
                    batch_first=True, bidirectional=[True], dropout=0.0),
        'rnn_pack': dict(input_size=[32], hidden_size=[16]),
        'VQ': dict(n_layers=1, n_embs=[16], emb_dim=[32]),
        'att': dict(in_size=16, hidden_size=32, heads=1),
        'app_order': ['rnn', 'VQ', 'rnn_pack'],
    }

    key = jax.random.PRNGKey(0)
    k_params, k_input = jax.random.split(key)
    enc = RnnPackEncoder(config, k_params)

    B, C_in, L = 2, config['conv']['in_channels'], 64
    x = jax.random.normal(k_input, (B, C_in, L), jnp.float32)
    lengths = [64, 48]

    out = enc(x, lengths)
    out = jax.block_until_ready(out)
    assert out.shape == (B, config['att']['in_size'] * config['att']['heads'])
    assert bool(jnp.all(jnp.isfinite(out)))
    print("KERNEL_OK")
</pallas_src>

<mosaic_0001>
module attributes {stable_mosaic.version = 11 : i64} {
  func.func @_conv1d_kernel(%arg0: i32, %arg1: memref<2x32x4xf32, #tpu.memory_space<vmem>>, %arg2: memref<2x32x4xf32, #tpu.memory_space<vmem>>, %arg3: memref<4x4x32xf32, #tpu.memory_space<vmem>>, %arg4: memref<1x32xf32, #tpu.memory_space<vmem>>, %arg5: memref<2x31x32xf32, #tpu.memory_space<vmem>>) attributes {dimension_semantics = [#tpu.dimension_semantics<arbitrary>], iteration_bounds = array<i64: 1>, scalar_prefetch = 0 : i64, scratch_operands = 0 : i64, tpu.core_type = #tpu.core_type<tc>, window_params = [{pipeline_mode = #tpu.pipeline_mode<synchronous>, transform_indices = @transform_0, window_bounds = array<i64: 2, 32, 4>}, {pipeline_mode = #tpu.pipeline_mode<synchronous>, transform_indices = @transform_1, window_bounds = array<i64: 2, 32, 4>}, {pipeline_mode = #tpu.pipeline_mode<synchronous>, transform_indices = @transform_2, window_bounds = array<i64: 4, 4, 32>}, {pipeline_mode = #tpu.pipeline_mode<synchronous>, transform_indices = @transform_3, window_bounds = array<i64: 1, 32>}, {pipeline_mode = #tpu.pipeline_mode<synchronous>, transform_indices = @transform_4, window_bounds = array<i64: 2, 31, 32>}]} {
    %c0 = arith.constant 0 : index
    %c0_0 = arith.constant 0 : index
    %0 = vector.load %arg4[%c0, %c0_0] : memref<1x32xf32, #tpu.memory_space<vmem>>, vector<1x32xf32>
    %cst = arith.constant 0.000000e+00 : f32
    %1 = vector.broadcast %cst : f32 to vector<31x32xf32>
    %c0_1 = arith.constant 0 : index
    %c0_2 = arith.constant 0 : index
    %c0_3 = arith.constant 0 : index
    %2 = vector.load %arg1[%c0_1, %c0_2, %c0_3] : memref<2x32x4xf32, #tpu.memory_space<vmem>>, vector<1x31x4xf32>
    %3 = vector.shape_cast %2 : vector<1x31x4xf32> to vector<31x4xf32>
    %c0_4 = arith.constant 0 : index
    %c0_5 = arith.constant 0 : index
    %c0_6 = arith.constant 0 : index
    %4 = vector.load %arg3[%c0_4, %c0_5, %c0_6] : memref<4x4x32xf32, #tpu.memory_space<vmem>>, vector<1x4x32xf32>
    %5 = vector.shape_cast %4 : vector<1x4x32xf32> to vector<4x32xf32>
    %cst_7 = arith.constant dense<0.000000e+00> : vector<31x32xf32>
    %6 = tpu.matmul %3, %5, %cst_7 {dimension_numbers = #tpu.dot_dimension_numbers<[1], [0], [0], [1], [0, 0, 1, 1], [], []>} : vector<31x4xf32>, vector<4x32xf32>, vector<31x32xf32> -> vector<31x32xf32>
    %7 = arith.addf %1, %6 : vector<31x32xf32>
    %c0_8 = arith.constant 0 : index
    %c0_9 = arith.constant 0 : index
    %c0_10 = arith.constant 0 : index
    %8 = vector.load %arg2[%c0_8, %c0_9, %c0_10] : memref<2x32x4xf32, #tpu.memory_space<vmem>>, vector<1x31x4xf32>
    %9 = vector.shape_cast %8 : vector<1x31x4xf32> to vector<31x4xf32>
    %c1 = arith.constant 1 : index
    %c0_11 = arith.constant 0 : index
    %c0_12 = arith.constant 0 : index
    %10 = vector.load %arg3[%c1, %c0_11, %c0_12] : memref<4x4x32xf32, #tpu.memory_space<vmem>>, vector<1x4x32xf32>
    %11 = vector.shape_cast %10 : vector<1x4x32xf32> to vector<4x32xf32>
    %cst_13 = arith.constant dense<0.000000e+00> : vector<31x32xf32>
    %12 = tpu.matmul %9, %11, %cst_13 {dimension_numbers = #tpu.dot_dimension_numbers<[1], [0], [0], [1], [0, 0, 1, 1], [], []>} : vector<31x4xf32>, vector<4x32xf32>, vector<31x32xf32> -> vector<31x32xf32>
    %13 = arith.addf %7, %12 : vector<31x32xf32>
    %c0_14 = arith.constant 0 : index
    %c1_15 = arith.constant 1 : index
    %c0_16 = arith.constant 0 : index
    %14 = vector.load %arg1[%c0_14, %c1_15, %c0_16] : memref<2x32x4xf32, #tpu.memory_space<vmem>>, vector<1x31x4xf32>
    %15 = vector.shape_cast %14 : vector<1x31x4xf32> to vector<31x4xf32>
    %c2 = arith.constant 2 : index
    %c0_17 = arith.constant 0 : index
    %c0_18 = arith.constant 0 : index
    %16 = vector.load %arg3[%c2, %c0_17, %c0_18] : memref<4x4x32xf32, #tpu.memory_space<vmem>>, vector<1x4x32xf32>
    %17 = vector.shape_cast %16 : vector<1x4x32xf32> to vector<4x32xf32>
    %cst_19 = arith.constant dense<0.000000e+00> : vector<31x32xf32>
    %18 = tpu.matmul %15, %17, %cst_19 {dimension_numbers = #tpu.dot_dimension_numbers<[1], [0], [0], [1], [0, 0, 1, 1], [], []>} : vector<31x4xf32>, vector<4x32xf32>, vector<31x32xf32> -> vector<31x32xf32>
    %19 = arith.addf %13, %18 : vector<31x32xf32>
    %c0_20 = arith.constant 0 : index
    %c1_21 = arith.constant 1 : index
    %c0_22 = arith.constant 0 : index
    %20 = vector.load %arg2[%c0_20, %c1_21, %c0_22] : memref<2x32x4xf32, #tpu.memory_space<vmem>>, vector<1x31x4xf32>
    %21 = vector.shape_cast %20 : vector<1x31x4xf32> to vector<31x4xf32>
    %c3 = arith.constant 3 : index
    %c0_23 = arith.constant 0 : index
    %c0_24 = arith.constant 0 : index
    %22 = vector.load %arg3[%c3, %c0_23, %c0_24] : memref<4x4x32xf32, #tpu.memory_space<vmem>>, vector<1x4x32xf32>
    %23 = vector.shape_cast %22 : vector<1x4x32xf32> to vector<4x32xf32>
    %cst_25 = arith.constant dense<0.000000e+00> : vector<31x32xf32>
    %24 = tpu.matmul %21, %23, %cst_25 {dimension_numbers = #tpu.dot_dimension_numbers<[1], [0], [0], [1], [0, 0, 1, 1], [], []>} : vector<31x4xf32>, vector<4x32xf32>, vector<31x32xf32> -> vector<31x32xf32>
    %25 = arith.addf %19, %24 : vector<31x32xf32>
    %26 = vector.broadcast %0 : vector<1x32xf32> to vector<31x32xf32>
    %27 = arith.addf %25, %26 : vector<31x32xf32>
    %c0_26 = arith.constant 0 : index
    %c0_27 = arith.constant 0 : index
    %c0_28 = arith.constant 0 : index
    %28 = vector.load %arg5[%c0_26, %c0_27, %c0_28] : memref<2x31x32xf32, #tpu.memory_space<vmem>>, vector<1x31x32xf32>
    %29 = vector.shape_cast %28 : vector<1x31x32xf32> to vector<31x32xf32>
    %30 = vector.shape_cast %27 : vector<31x32xf32> to vector<1x31x32xf32>
    tpu.vector_store %arg5[%c0_26, %c0_27, %c0_28], %30 {strides = array<i32>} : memref<2x31x32xf32, #tpu.memory_space<vmem>>, vector<1x31x32xf32>,
    %cst_29 = arith.constant 0.000000e+00 : f32
    %31 = vector.broadcast %cst_29 : f32 to vector<31x32xf32>
    %c1_30 = arith.constant 1 : index
    %c0_31 = arith.constant 0 : index
    %c0_32 = arith.constant 0 : index
    %32 = vector.load %arg1[%c1_30, %c0_31, %c0_32] : memref<2x32x4xf32, #tpu.memory_space<vmem>>, vector<1x31x4xf32>
    %33 = vector.shape_cast %32 : vector<1x31x4xf32> to vector<31x4xf32>
    %c0_33 = arith.constant 0 : index
    %c0_34 = arith.constant 0 : index
    %c0_35 = arith.constant 0 : index
    %34 = vector.load %arg3[%c0_33, %c0_34, %c0_35] : memref<4x4x32xf32, #tpu.memory_space<vmem>>, vector<1x4x32xf32>
    %35 = vector.shape_cast %34 : vector<1x4x32xf32> to vector<4x32xf32>
    %cst_36 = arith.constant dense<0.000000e+00> : vector<31x32xf32>
    %36 = tpu.matmul %33, %35, %cst_36 {dimension_numbers = #tpu.dot_dimension_numbers<[1], [0], [0], [1], [0, 0, 1, 1], [], []>} : vector<31x4xf32>, vector<4x32xf32>, vector<31x32xf32> -> vector<31x32xf32>
    %37 = arith.addf %31, %36 : vector<31x32xf32>
    %c1_37 = arith.constant 1 : index
    %c0_38 = arith.constant 0 : index
    %c0_39 = arith.constant 0 : index
    %38 = vector.load %arg2[%c1_37, %c0_38, %c0_39] : memref<2x32x4xf32, #tpu.memory_space<vmem>>, vector<1x31x4xf32>
    %39 = vector.shape_cast %38 : vector<1x31x4xf32> to vector<31x4xf32>
    %c1_40 = arith.constant 1 : index
    %c0_41 = arith.constant 0 : index
    %c0_42 = arith.constant 0 : index
    %40 = vector.load %arg3[%c1_40, %c0_41, %c0_42] : memref<4x4x32xf32, #tpu.memory_space<vmem>>, vector<1x4x32xf32>
    %41 = vector.shape_cast %40 : vector<1x4x32xf32> to vector<4x32xf32>
    %cst_43 = arith.constant dense<0.000000e+00> : vector<31x32xf32>
    %42 = tpu.matmul %39, %41, %cst_43 {dimension_numbers = #tpu.dot_dimension_numbers<[1], [0], [0], [1], [0, 0, 1, 1], [], []>} : vector<31x4xf32>, vector<4x32xf32>, vector<31x32xf32> -> vector<31x32xf32>
    %43 = arith.addf %37, %42 : vector<31x32xf32>
    %c1_44 = arith.constant 1 : index
    %c1_45 = arith.constant 1 : index
    %c0_46 = arith.constant 0 : index
    %44 = vector.load %arg1[%c1_44, %c1_45, %c0_46] : memref<2x32x4xf32, #tpu.memory_space<vmem>>, vector<1x31x4xf32>
    %45 = vector.shape_cast %44 : vector<1x31x4xf32> to vector<31x4xf32>
    %c2_47 = arith.constant 2 : index
    %c0_48 = arith.constant 0 : index
    %c0_49 = arith.constant 0 : index
    %46 = vector.load %arg3[%c2_47, %c0_48, %c0_49] : memref<4x4x32xf32, #tpu.memory_space<vmem>>, vector<1x4x32xf32>
    %47 = vector.shape_cast %46 : vector<1x4x32xf32> to vector<4x32xf32>
    %cst_50 = arith.constant dense<0.000000e+00> : vector<31x32xf32>
    %48 = tpu.matmul %45, %47, %cst_50 {dimension_numbers = #tpu.dot_dimension_numbers<[1], [0], [0], [1], [0, 0, 1, 1], [], []>} : vector<31x4xf32>, vector<4x32xf32>, vector<31x32xf32> -> vector<31x32xf32>
    %49 = arith.addf %43, %48 : vector<31x32xf32>
    %c1_51 = arith.constant 1 : index
    %c1_52 = arith.constant 1 : index
    %c0_53 = arith.constant 0 : index
    %50 = vector.load %arg2[%c1_51, %c1_52, %c0_53] : memref<2x32x4xf32, #tpu.memory_space<vmem>>, vector<1x31x4xf32>
    %51 = vector.shape_cast %50 : vector<1x31x4xf32> to vector<31x4xf32>
    %c3_54 = arith.constant 3 : index
    %c0_55 = arith.constant 0 : index
    %c0_56 = arith.constant 0 : index
    %52 = vector.load %arg3[%c3_54, %c0_55, %c0_56] : memref<4x4x32xf32, #tpu.memory_space<vmem>>, vector<1x4x32xf32>
    %53 = vector.shape_cast %52 : vector<1x4x32xf32> to vector<4x32xf32>
    %cst_57 = arith.constant dense<0.000000e+00> : vector<31x32xf32>
    %54 = tpu.matmul %51, %53, %cst_57 {dimension_numbers = #tpu.dot_dimension_numbers<[1], [0], [0], [1], [0, 0, 1, 1], [], []>} : vector<31x4xf32>, vector<4x32xf32>, vector<31x32xf32> -> vector<31x32xf32>
    %55 = arith.addf %49, %54 : vector<31x32xf32>
    %56 = vector.broadcast %0 : vector<1x32xf32> to vector<31x32xf32>
    %57 = arith.addf %55, %56 : vector<31x32xf32>
    %c1_58 = arith.constant 1 : index
    %c0_59 = arith.constant 0 : index
    %c0_60 = arith.constant 0 : index
    %58 = vector.load %arg5[%c1_58, %c0_59, %c0_60] : memref<2x31x32xf32, #tpu.memory_space<vmem>>, vector<1x31x32xf32>
    %59 = vector.shape_cast %58 : vector<1x31x32xf32> to vector<31x32xf32>
    %60 = vector.shape_cast %57 : vector<31x32xf32> to vector<1x31x32xf32>
    tpu.vector_store %arg5[%c1_58, %c0_59, %c0_60], %60 {strides = array<i32>} : memref<2x31x32xf32, #tpu.memory_space<vmem>>, vector<1x31x32xf32>,
    return
  }
  func.func @transform_0(%arg0: i32) -> (i32, i32, i32) {
    %c0_i32 = arith.constant 0 : i32
    %c0_i32_0 = arith.constant 0 : i32
    %c0_i32_1 = arith.constant 0 : i32
    %c0_i32_2 = arith.constant 0 : i32
    return %c0_i32, %c0_i32_0, %c0_i32_1 : i32, i32, i32
  }
  func.func @transform_1(%arg0: i32) -> (i32, i32, i32) {
    %c0_i32 = arith.constant 0 : i32
    %c0_i32_0 = arith.constant 0 : i32
    %c0_i32_1 = arith.constant 0 : i32
    %c0_i32_2 = arith.constant 0 : i32
    return %c0_i32, %c0_i32_0, %c0_i32_1 : i32, i32, i32
  }
  func.func @transform_2(%arg0: i32) -> (i32, i32, i32) {
    %c0_i32 = arith.constant 0 : i32
    %c0_i32_0 = arith.constant 0 : i32
    %c0_i32_1 = arith.constant 0 : i32
    %c0_i32_2 = arith.constant 0 : i32
    return %c0_i32, %c0_i32_0, %c0_i32_1 : i32, i32, i32
  }
  func.func @transform_3(%arg0: i32) -> (i32, i32) {
    %c0_i32 = arith.constant 0 : i32
    %c0_i32_0 = arith.constant 0 : i32
    %c0_i32_1 = arith.constant 0 : i32
    return %c0_i32, %c0_i32_0 : i32, i32
  }
  func.func @transform_4(%arg0: i32) -> (i32, i32, i32) {
    %c0_i32 = arith.constant 0 : i32
    %c0_i32_0 = arith.constant 0 : i32
    %c0_i32_1 = arith.constant 0 : i32
    %c0_i32_2 = arith.constant 0 : i32
    return %c0_i32, %c0_i32_0, %c0_i32_1 : i32, i32, i32
  }
}

</mosaic_0001>

<bundles_post_ra>
// kernel: tpu_custom_call.1
= control target key start
LH: loop header
LB: loop body
LE: loop exit
PB: predicated region body
PF: predicated region fallthrough
CT: control target
= control target key end

     0   :  { %vm42_vm0 = vcmask 1043456   ;;  %vm29_vm1 = vcmask 31744   ;;  %vm461_vm2 = vcmask 261120   ;;  %vm465_vm3 = vcmask 260096   ;;  %s1331_s2 = inlined_call_operand.vmem [shape: f32[4,4,32], index: 2, kind: input, shape index: {}]   ;;  %s1332_s1 = inlined_call_operand.vmem [shape: f32[2,32,4], index: 1, kind: input, shape index: {}]   ;;  %s1333_s0 = inlined_call_operand.vmem [shape: f32[2,32,4], index: 0, kind: input, shape index: {}]   ;;  %s1334_s3 = inlined_call_operand.vmem [shape: f32[1,32], index: 3, kind: input, shape index: {}]   ;;  %s1335_s4 = inlined_call_operand.vmem [shape: f32[2,31,32], index: 4, kind: output, shape index: {}]  }
   0x1   :  { %v910_v0 = vld [vmem:[%s1331_s2 + $0x4] sm:$0xf]  ;;  %v24_v4 = vld [vmem:[%s1332_s1 + $0x8] sm:$0xff]  ;;  %v22_v5 = vld [vmem:[%s1331_s2] sm:$0xf] }
   0x2   :  { %v942_v1 = vld [vmem:[%s1331_s2 + $0x4] sm:$0xf]  ;;  %1017 = vmatprep.subr.msk.mxu0 %vm42_vm0, %v910_v0  ;;  %v939_v6 = vld [vmem:[%s1332_s1 + $0x28] sm:$0xff]  ;;  %v472_v7 = vld [vmem:[%s1331_s2] sm:$0xf] }
   0x3   :  { %v23_v2 = vld [vmem:[%s1332_s1] sm:$0xff]  ;;  %1049 = vmatprep.subr.msk.mxu1 %vm42_vm0, %v942_v1  ;;  %1018 = vmatpush3.msk.msra.mxu0 %vm42_vm0, %v910_v0  ;;  %v25_v8 = vld [vmem:[%s1332_s1 + $0x10] sm:$0xff]  ;;  %v26_v10 = vld [vmem:[%s1332_s1 + $0x18] sm:$0x7f] }
   0x4   :  { %v938_v3 = vld [vmem:[%s1332_s1 + $0x20] sm:$0xff]  ;;  %1019 = vmatprep.mubr.msk.f32.mxu0 %vm29_vm1, %v23_v2  ;;  %1050 = vmatpush3.msk.msra.mxu1 %vm42_vm0, %v942_v1  ;;  %v940_v9 = vld [vmem:[%s1332_s1 + $0x30] sm:$0xff]  ;;  %v921_v11 = vld [vmem:[%s1331_s2 + $0x8] sm:$0xf] }
   0x5   :  { %1051 = vmatprep.mubr.msk.f32.mxu1 %vm29_vm1, %v938_v3  ;;  %1020 = vmatmul.mubr.msk.f32.vlgmr.msra.gmra.mrb[0].mxu0 %vm29_vm1, %v24_v4  ;;  %v941_v12 = vld [vmem:[%s1332_s1 + $0x38] sm:$0x7f]  ;;  %v18_v13 = vld [vmem:[%s1333_s0] sm:$0xff]  ;;  %v957_v15 = vld [vmem:[%s1331_s2 + $0x8] sm:$0xf] }
   0x6   :  { %1025 = vmatprep.subr.msk.mxu0 %vm42_vm0, %v22_v5  ;;  %1052 = vmatmul.mubr.msk.f32.vlgmr.msra.gmra.mrb[0].mxu1 %vm29_vm1, %v939_v6  ;;  %v934_v14 = vld [vmem:[%s1333_s0 + $0x20] sm:$0xff]  ;;  %v19_v16 = vld [vmem:[%s1333_s0 + $0x8] sm:$0xff]  ;;  %v20_v18 = vld [vmem:[%s1333_s0 + $0x10] sm:$0xff] }
   0x7   :  { %1057 = vmatprep.subr.msk.mxu1 %vm42_vm0, %v472_v7  ;;  %1026 = vmatpush3.msk.msra.mxu0 %vm42_vm0, %v22_v5  ;;  %v935_v17 = vld [vmem:[%s1333_s0 + $0x28] sm:$0xff]  ;;  %v936_v19 = vld [vmem:[%s1333_s0 + $0x30] sm:$0xff]  ;;  %v21_v21 = vld [vmem:[%s1333_s0 + $0x18] sm:$0x7f] }
   0x8   :  { %1058 = vmatpush3.msk.msra.mxu1 %vm42_vm0, %v472_v7  ;;  %1022 = vmatprep.mubr.msk.f32.mxu0 %vm29_vm1, %v25_v8  ;;  %v927_v20 = vld [vmem:[%s1331_s2 + $0xc] sm:$0xf]  ;;  %v937_v23 = vld [vmem:[%s1333_s0 + $0x38] sm:$0x7f]  ;;  %v231_v24 = vld [vmem:[%s1333_s0 + $0x1] sm:$0xff] }
   0x9   :  { %1054 = vmatprep.mubr.msk.f32.mxu1 %vm29_vm1, %v940_v9  ;;  %1023 = vmatmul.mubr.msk.f32.gmra.mrb[2].mxu0 %vm29_vm1, %v26_v10  ;;  %v967_v22 = vld [vmem:[%s1331_s2 + $0xc] sm:$0xf]  ;;  %v953_v25 = vld [vmem:[%s1333_s0 + $0x21] sm:$0xff]  ;;  %v233_v28 = vld [vmem:[%s1333_s0 + $0x11] sm:$0xff] }
   0xa   :  { %1033 = vmatprep.subr.msk.mxu0 %vm42_vm0, %v921_v11  ;;  %1055 = vmatmul.mubr.msk.f32.gmra.mrb[2].mxu1 %vm29_vm1, %v941_v12  ;;  %v232_v26 = vld [vmem:[%s1333_s0 + $0x9] sm:$0xff]  ;;  %v955_v29 = vld [vmem:[%s1333_s0 + $0x31] sm:$0xff]  ;;  %v234_v30 = vld [vmem:[%s1333_s0 + $0x19] sm:$0x7f] }
   0xb   :  { %1027 = vmatprep.mubr.msk.f32.mxu0 %vm29_vm1, %v18_v13  ;;  %1059 = vmatprep.mubr.msk.f32.mxu1 %vm29_vm1, %v934_v14  ;;  %v954_v27 = vld [vmem:[%s1333_s0 + $0x29] sm:$0xff]  ;;  %v956_v31 = vld [vmem:[%s1333_s0 + $0x39] sm:$0x7f]  ;;  %v341_v32 = vld [vmem:[%s1332_s1 + $0x1] sm:$0xff] }
   0xc   :  { %1065 = vmatprep.subr.msk.mxu1 %vm42_vm0, %v957_v15  ;;  %v963_v33 = vld [vmem:[%s1332_s1 + $0x21] sm:$0xff]  ;;  %v342_v34 = vld [vmem:[%s1332_s1 + $0x9] sm:$0xff]  ;;  %v343_v36 = vld [vmem:[%s1332_s1 + $0x11] sm:$0xff] }
   0xd   :  { %1028 = vmatmul.mubr.msk.f32.vlgmr.msra.gmra.mrb[0].mxu0 %vm29_vm1, %v19_v16  ;;  %v964_v35 = vld [vmem:[%s1332_s1 + $0x29] sm:$0xff]  ;;  %v965_v37 = vld [vmem:[%s1332_s1 + $0x31] sm:$0xff]  ;;  %v344_v38 = vld [vmem:[%s1332_s1 + $0x19] sm:$0x7f] }
   0xe   :  { %1060 = vmatmul.mubr.msk.f32.vlgmr.msra.gmra.mrb[0].mxu1 %vm29_vm1, %v935_v17  ;;  %1034 = vmatpush3.msk.msra.mxu0 %vm42_vm0, %v921_v11  ;;  %v966_v39 = vld [vmem:[%s1332_s1 + $0x39] sm:$0x7f]  ;;  %v933_v40 = vld [vmem:[%s1334_s3] ss:$0 sm:$0xff] }
   0xf   :  { %1066 = vmatpush3.msk.msra.mxu1 %vm42_vm0, %v957_v15  ;;  %1030 = vmatprep.mubr.msk.f32.mxu0 %vm29_vm1, %v20_v18 }
  0x10   :  { %1062 = vmatprep.mubr.msk.f32.mxu1 %vm29_vm1, %v936_v19  ;;  %1041 = vmatprep.subr.msk.mxu0 %vm42_vm0, %v927_v20 }
  0x11   :  { %1031 = vmatmul.mubr.msk.f32.gmra.mrb[2].mxu0 %vm29_vm1, %v21_v21  ;;  %1073 = vmatprep.subr.msk.mxu1 %vm42_vm0, %v967_v22 }
  0x12   :  { %1063 = vmatmul.mubr.msk.f32.gmra.mrb[2].mxu1 %vm29_vm1, %v937_v23  ;;  %1035 = vmatprep.mubr.msk.f32.mxu0 %vm29_vm1, %v231_v24 }
  0x13   :  { %1067 = vmatprep.mubr.msk.f32.mxu1 %vm29_vm1, %v953_v25 }
  0x15   :  { %1036 = vmatmul.mubr.msk.f32.vlgmr.msra.gmra.mrb[0].mxu0 %vm29_vm1, %v232_v26 }
  0x16   :  { %1068 = vmatmul.mubr.msk.f32.vlgmr.msra.gmra.mrb[0].mxu1 %vm29_vm1, %v954_v27  ;;  %1042 = vmatpush3.msk.msra.mxu0 %vm42_vm0, %v927_v20 }
  0x17   :  { %1074 = vmatpush3.msk.msra.mxu1 %vm42_vm0, %v967_v22  ;;  %1038 = vmatprep.mubr.msk.f32.mxu0 %vm29_vm1, %v233_v28 }
  0x18   :  { %1070 = vmatprep.mubr.msk.f32.mxu1 %vm29_vm1, %v955_v29 }
  0x19   :  { %1039 = vmatmul.mubr.msk.f32.gmra.mrb[2].mxu0 %vm29_vm1, %v234_v30 }
  0x1a   :  { %1071 = vmatmul.mubr.msk.f32.gmra.mrb[2].mxu1 %vm29_vm1, %v956_v31  ;;  %1043 = vmatprep.mubr.msk.f32.mxu0 %vm29_vm1, %v341_v32 }
  0x1b   :  { %1075 = vmatprep.mubr.msk.f32.mxu1 %vm29_vm1, %v963_v33 }
  0x1d   :  { %1044 = vmatmul.mubr.msk.f32.vlgmr.msra.gmra.mrb[0].mxu0 %vm29_vm1, %v342_v34 }
  0x1e   :  { %1076 = vmatmul.mubr.msk.f32.vlgmr.msra.gmra.mrb[0].mxu1 %vm29_vm1, %v964_v35  ;;  %1046 = vmatprep.mubr.msk.f32.mxu0 %vm29_vm1, %v343_v36 }
  0x1f   :  { %1078 = vmatprep.mubr.msk.f32.mxu1 %vm29_vm1, %v965_v37 }
  0x21   :  { %1047 = vmatmul.mubr.msk.f32.gmra.mrb[2].mxu0 %vm29_vm1, %v344_v38 }
  0x22   :  { %1079 = vmatmul.mubr.msk.f32.gmra.mrb[2].mxu1 %vm29_vm1, %v966_v39 }
  0xf0   :  { %v1045_v41 = vpop.f32.mrb[0].mxu0 }
  0xf1   :  { %v458_v42 = vadd.f32 %v1045_v41, %v933_v40  ;;  %v1077_v43 = vpop.f32.mrb[0].mxu1  ;;  %v428_v44 = vpop.f32.mrb[1].mxu0 }
  0xf2   :  { %v898_v45 = vadd.f32 %v1077_v43, %v933_v40  ;;  %v457_v46 = vadd.f32 %v933_v40, %v428_v44  ;;  %v874_v47 = vpop.f32.mrb[1].mxu1 }
  0xf3   :  { %463 = vst.msk [vmem:[%s1335_s4 + $0x8] sm:$0xff] %vm461_vm2, %v458_v42  ;;  %v897_v48 = vadd.f32 %v933_v40, %v874_v47 }
  0xf4   :  { %974 = vst.msk [vmem:[%s1335_s4 + $0x28] sm:$0xff] %vm461_vm2, %v898_v45  ;;  %462 = vst.msk [vmem:[%s1335_s4] sm:$0xff] %vm461_vm2, %v457_v46  ;;  %v1048_v49 = vpop.f32.mrb[2].mxu0 }
  0xf5   :  { %973 = vst.msk [vmem:[%s1335_s4 + $0x20] sm:$0xff] %vm461_vm2, %v897_v48  ;;  %v460_v50 = vadd.f32 %v1048_v49, %v933_v40  ;;  %v1080_v51 = vpop.f32.mrb[2].mxu1  ;;  %v438_v52 = vpop.f32.mrb[3].mxu0 }
  0xf6   :  { %v900_v53 = vadd.f32 %v1080_v51, %v933_v40  ;;  %v459_v54 = vadd.f32 %v933_v40, %v438_v52  ;;  %v884_v55 = vpop.f32.mrb[3].mxu1 }
  0xf7   :  { %466 = vst.msk [vmem:[%s1335_s4 + $0x18] sm:$0x7f] %vm465_vm3, %v460_v50  ;;  %v899_v56 = vadd.f32 %v933_v40, %v884_v55 }
  0xf8   :  { %976 = vst.msk [vmem:[%s1335_s4 + $0x38] sm:$0x7f] %vm465_vm3, %v900_v53 }
  0xf9   :  { %464 = vst.msk [vmem:[%s1335_s4 + $0x10] sm:$0xff] %vm461_vm2, %v459_v54  ;;  %975 = vst.msk [vmem:[%s1335_s4 + $0x30] sm:$0xff] %vm461_vm2, %v899_v56 }

</bundles_post_ra>
